<compile_context>
chip_gen: v7x
topology: tpu7x:2x2x1
jax: 0.10.0
libtpu: 0.0.40
codegen_flags: <defaults>
</compile_context>

<pallas_src>
import jax
import jax.numpy as jnp
from jax.experimental import pallas as pl
from jax.experimental.pallas import tpu as pltpu


def _round_up(x: int, m: int) -> int:
    return ((x + m - 1) // m) * m


def style_embedder_kernel(x_ref, vt_ref, sb_ref, o_ref):
    # x_ref:  (tb, D_in)   native dtype
    # vt_ref: (D_in, Hp)   native dtype (pre-transposed, zero-padded Linear weight)
    # sb_ref: (2, Hp)      f32, row 0 = weight-norm scale s = g/||v||, row 1 = bias
    # o_ref:  (tb, Hp)
    y = jnp.dot(x_ref[...], vt_ref[...], preferred_element_type=jnp.float32)  # MXU
    o_ref[...] = (y * sb_ref[0:1, :] + sb_ref[1:2, :]).astype(o_ref.dtype)    # VPU FMA


def style_embedder_forward(labels, v, g, b, *, block_b=512):
    """labels: (B, D_in); v: (H, D_in); g: (H,); b: (H,) -> (B, H).

    Computes weight_norm(Linear)(labels) == labels @ (g * v / ||v||).T + b.
    """
    B, D_in = labels.shape
    H = v.shape[0]
    dtype = labels.dtype
    itemsize = jnp.dtype(dtype).itemsize

    # --- wrapper-side (one-time) prep: hoisted weight-norm scale, f32 master ---
    v32 = v.astype(jnp.float32)
    s = g.astype(jnp.float32) * jax.lax.rsqrt(jnp.sum(v32 * v32, axis=1))  # (H,)

    # Lane-dense output: pad the hidden dim to a multiple of 128.
    Hp = _round_up(max(H, 128), 128)
    vt = jnp.transpose(v)  # (D_in, H)
    if Hp != H:
        vt = jnp.pad(vt, ((0, 0), (0, Hp - H)))
        s = jnp.pad(s, (0, Hp - H))
        bias = jnp.pad(b.astype(jnp.float32), (0, Hp - H))
    else:
        bias = b.astype(jnp.float32)
    sb = jnp.stack([s, bias])  # (2, Hp) f32, lane-dense packed params

    vt_itemsize = jnp.dtype(vt.dtype).itemsize

    # --- B tiling: cdiv-style with zero padding (no whole-batch-resident fallback) ---
    tb = min(block_b, _round_up(B, 8))
    tb = max(8, (tb // 8) * 8)

    def vmem_need(tb_):
        # double-buffered x and y tiles + double-buffered (grid-invariant) weight + params
        return (2 * tb_ * D_in * itemsize
                + 2 * tb_ * Hp * itemsize
                + 2 * D_in * Hp * vt_itemsize
                + 4 * Hp * 4)

    VMEM_BUDGET = 24 << 20  # conservative: fits v7x (64 MiB) and v5e default scoped limit
    while tb > 8 and vmem_need(tb) > VMEM_BUDGET:
        tb //= 2
        tb = max(8, (tb // 8) * 8)

    Bp = _round_up(B, tb)
    x = labels if Bp == B else jnp.pad(labels, ((0, Bp - B), (0, 0)))
    grid_b = Bp // tb

    cost = pl.CostEstimate(
        flops=2 * Bp * D_in * Hp,
        transcendentals=0,
        bytes_accessed=(Bp * D_in * itemsize          # x read
                        + D_in * Hp * vt_itemsize     # weight read (once)
                        + 2 * Hp * 4                  # scale + bias
                        + Bp * Hp * itemsize),        # y write
    )

    vmem_limit = min(32 << 20, max(4 << 20, 2 * vmem_need(tb)))

    out = pl.pallas_call(
        style_embedder_kernel,
        out_shape=jax.ShapeDtypeStruct((Bp, Hp), dtype),
        grid_spec=pltpu.PrefetchScalarGridSpec(
            num_scalar_prefetch=0,
            grid=(grid_b,),
            in_specs=[
                pl.BlockSpec((tb, D_in), lambda i: (i, 0)),   # x: tiled over batch
                pl.BlockSpec((D_in, Hp), lambda i: (0, 0)),   # weight: grid-invariant
                pl.BlockSpec((2, Hp), lambda i: (0, 0)),      # packed scale/bias
            ],
            out_specs=pl.BlockSpec((tb, Hp), lambda i: (i, 0)),
        ),
        compiler_params=pltpu.CompilerParams(
            dimension_semantics=("parallel",),   # shards B tiles across TCs on v7x
            vmem_limit_bytes=vmem_limit,
        ),
        cost_estimate=cost,
    )(x, vt, sb)

    if Bp != B or Hp != H:
        out = out[:B, :H]
    return out


if __name__ == "__main__":
    # Small shapes consistent with the module: batch=8, input_size=16, hidden=32
    B, input_size, hidden_size = 8, 16, 32
    dropout_prob = 0.0  # -> forward uses the weight-normed linear path

    key = jax.random.PRNGKey(0)
    k_x, k_v, k_g, k_b = jax.random.split(key, 4)

    labels = jax.random.normal(k_x, (B, input_size), dtype=jnp.float32)
    # nn.Linear weight (hidden, input) and bias (hidden); weight_norm params v, g
    v = jax.random.normal(k_v, (hidden_size, input_size), dtype=jnp.float32) * 0.1
    # torch initializes g = ||v|| per row; perturb slightly so g != ||v|| exactly
    g = jnp.sqrt(jnp.sum(v * v, axis=1)) * (
        1.0 + 0.1 * jax.random.normal(k_g, (hidden_size,), dtype=jnp.float32)
    )
    b = jax.random.normal(k_b, (hidden_size,), dtype=jnp.float32) * 0.01

    out = style_embedder_forward(labels, v, g, b)
    out = jax.block_until_ready(out)

    # Pure-JAX reference for the weight_norm linear
    w_ref = v * (g / jnp.sqrt(jnp.sum(v * v, axis=1)))[:, None]
    ref = labels @ w_ref.T + b[None, :]

    assert out.shape == (B, hidden_size)
    assert jnp.allclose(out, ref, atol=1e-5, rtol=1e-5), "mismatch vs reference"
    print("KERNEL_OK")
</pallas_src>

<mosaic_0001>
module attributes {stable_mosaic.version = 11 : i64} {
  func.func @style_embedder_kernel(%arg0: i32, %arg1: memref<8x16xf32, #tpu.memory_space<vmem>>, %arg2: memref<16x128xf32, #tpu.memory_space<vmem>>, %arg3: memref<2x128xf32, #tpu.memory_space<vmem>>, %arg4: memref<8x128xf32, #tpu.memory_space<vmem>>) attributes {dimension_semantics = [#tpu.dimension_semantics<parallel>], iteration_bounds = array<i64: 1>, scalar_prefetch = 0 : i64, scratch_operands = 0 : i64, tpu.core_type = #tpu.core_type<tc>, window_params = [{transform_indices = @transform_0, window_bounds = array<i64: 8, 16>}, {pipeline_mode = #tpu.pipeline_mode<synchronous>, transform_indices = @transform_1, window_bounds = array<i64: 16, 128>}, {pipeline_mode = #tpu.pipeline_mode<synchronous>, transform_indices = @transform_2, window_bounds = array<i64: 2, 128>}, {transform_indices = @transform_3, window_bounds = array<i64: 8, 128>}]} {
    %c0 = arith.constant 0 : index
    %c0_0 = arith.constant 0 : index
    %0 = vector.load %arg1[%c0, %c0_0] : memref<8x16xf32, #tpu.memory_space<vmem>>, vector<8x16xf32>
    %c0_1 = arith.constant 0 : index
    %c0_2 = arith.constant 0 : index
    %1 = vector.load %arg2[%c0_1, %c0_2] : memref<16x128xf32, #tpu.memory_space<vmem>>, vector<16x128xf32>
    %cst = arith.constant dense<0.000000e+00> : vector<8x128xf32>
    %2 = tpu.matmul %0, %1, %cst {dimension_numbers = #tpu.dot_dimension_numbers<[1], [0], [0], [1], [0, 0, 1, 1], [], []>} : vector<8x16xf32>, vector<16x128xf32>, vector<8x128xf32> -> vector<8x128xf32>
    %c0_3 = arith.constant 0 : index
    %c0_4 = arith.constant 0 : index
    %3 = vector.load %arg3[%c0_3, %c0_4] : memref<2x128xf32, #tpu.memory_space<vmem>>, vector<1x128xf32>
    %4 = vector.broadcast %3 : vector<1x128xf32> to vector<8x128xf32>
    %5 = arith.mulf %2, %4 : vector<8x128xf32>
    %c1 = arith.constant 1 : index
    %c0_5 = arith.constant 0 : index
    %6 = vector.load %arg3[%c1, %c0_5] : memref<2x128xf32, #tpu.memory_space<vmem>>, vector<1x128xf32>
    %7 = vector.broadcast %6 : vector<1x128xf32> to vector<8x128xf32>
    %8 = arith.addf %5, %7 : vector<8x128xf32>
    %c0_6 = arith.constant 0 : index
    %c0_7 = arith.constant 0 : index
    %9 = vector.load %arg4[%c0_6, %c0_7] : memref<8x128xf32, #tpu.memory_space<vmem>>, vector<8x128xf32>
    tpu.vector_store %arg4[%c0_6, %c0_7], %8 {strides = array<i32>} : memref<8x128xf32, #tpu.memory_space<vmem>>, vector<8x128xf32>,
    return
  }
  func.func @transform_0(%arg0: i32) -> (i32, i32) {
    %c0_i32 = arith.constant 0 : i32
    %c0_i32_0 = arith.constant 0 : i32
    return %arg0, %c0_i32 : i32, i32
  }
  func.func @transform_1(%arg0: i32) -> (i32, i32) {
    %c0_i32 = arith.constant 0 : i32
    %c0_i32_0 = arith.constant 0 : i32
    %c0_i32_1 = arith.constant 0 : i32
    return %c0_i32, %c0_i32_0 : i32, i32
  }
  func.func @transform_2(%arg0: i32) -> (i32, i32) {
    %c0_i32 = arith.constant 0 : i32
    %c0_i32_0 = arith.constant 0 : i32
    %c0_i32_1 = arith.constant 0 : i32
    return %c0_i32, %c0_i32_0 : i32, i32
  }
  func.func @transform_3(%arg0: i32) -> (i32, i32) {
    %c0_i32 = arith.constant 0 : i32
    %c0_i32_0 = arith.constant 0 : i32
    return %arg0, %c0_i32 : i32, i32
  }
}

</mosaic_0001>

<bundles_post_ra>
// kernel: tpu_custom_call.1
= control target key start
LH: loop header
LB: loop body
LE: loop exit
PB: predicated region body
PF: predicated region fallthrough
CT: control target
= control target key end

     0   :  { %8 = vsyncpa [#allocation3], 0  ;;  %s320_s0 = inlined_call_operand.hbm [shape: f32[8,16], index: 0, kind: input, shape index: {}]   ;;  %s321_s1 = inlined_call_operand.hbm [shape: f32[16,128], index: 1, kind: input, shape index: {}]   ;;  %s322_s2 = inlined_call_operand.vmem [shape: f32[2,128], index: 2, kind: input, shape index: {}]   ;;  %s323_s3 = inlined_call_operand.hbm [shape: f32[8,128], index: 3, kind: output, shape index: {}]  }
   0x1   :  { %9 = vsyncpa [#allocation6], 0 }
   0x2   :  { %10 = vsyncpa [#allocation4], 0  ;;  %s243_s12 = smov [#allocation2]   ;;  %s244_s14 = smov [#allocation5]  }
   0x3   :  { %s17_s13 = sshll.u32 %s243_s12, 4  ;;  %s26_s15 = sshll.u32 %s244_s14, 4  ;;  %s18_s13 = int_to_ptr.vmem [resolvable:$true] %s17_s13  ;;  %s271_s15 = int_to_ptr.vmem [resolvable:$true] %s26_s15 }
   0x4   :  { %s171_s18 = scalar_lea.hbm %s320_s0, 128 }
   0x5   :  { %p172_p0 = scmp.ne.s32.totalorder %s320_s0, %s171_s18  ;;  %p175_p1 = scmp.lt.u32.totalorder %s171_s18, %s320_s0 }
   0x7   :  { %p177_p2 = pnand %p175_p1, %p172_p0 }
   0x9   :  { %180 = shalt.err (!%p177_p2)
}
   0xa   :  { %s181_s23 = scalar_lea.vmem %s18_s13, 128  ;;  %p186_p4 = scmp.lt.s32.totalorder %s18_s13, %s18_s13 }
   0xb   :  { %p182_p3 = scmp.ne.s32.totalorder %s18_s13, %s181_s23  ;;  %p187_p5 = scmp.lt.s32.totalorder %s181_s23, %s181_s23 }
   0xd   :  { %p188_p6 = por %p187_p5, %p186_p4 }
   0xf   :  { %p189_p7 = pnand %p188_p6, %p182_p3 }
  0x11   :  { %192 = shalt.err (!%p189_p7)
}
  0x12   :  { %20 = dma.hbm_to_vmem [thread:$0]  %s320_s0, 128, %s18_s13, [#allocation3]  }
  0x13   :  { %s193_s28 = scalar_lea.hbm %s321_s1, 256 }
  0x14   :  { %p194_p8 = scmp.ne.s32.totalorder %s321_s1, %s193_s28  ;;  %p197_p9 = scmp.lt.u32.totalorder %s193_s28, %s321_s1 }
  0x16   :  { %p199_p10 = pnand %p197_p9, %p194_p8 }
  0x18   :  { %202 = shalt.err (!%p199_p10)
}
  0x19   :  { %s203_s6 = scalar_lea.vmem %s271_s15, 256  ;;  %p208_p12 = scmp.lt.s32.totalorder %s271_s15, %s271_s15 }
  0x1a   :  { %p204_p11 = scmp.ne.s32.totalorder %s271_s15, %s203_s6  ;;  %p209_p13 = scmp.lt.s32.totalorder %s203_s6, %s203_s6 }
  0x1c   :  { %p210_p0 = por %p209_p13, %p208_p12 }
  0x1e   :  { %p211_p1 = pnand %p210_p0, %p204_p11 }
  0x20   :  { %214 = shalt.err (!%p211_p1)
}
  0x21   :  { %s245_s0 = smov 128   ;;  %s246_s7 = smov 8  }
  0x22   :  { %32 = dma.hbm_to_vmem [thread:$0]  %s321_s1, 256, %s271_s15, [#allocation6], %s245_s0, %s245_s0, %s246_s7  }
  0x23   :  { %237 = dma.done.wait [#allocation3], 128  }
  0x24   :  { %238 = vsyncadd [#allocation3], 4294967168 }
  0x25   :  { %239 = dma.done.wait [#allocation6], 256  }
  0x26   :  { %240 = vsyncadd [#allocation6], 4294967040  ;;  %v247_v0 = vmov 0.0|0.0   ;;  %vm248_vm0 = vmmov 0   ;;  %v249_v1 = vmov 0.0   ;;  %v42_v2 = vld [vmem:[#allocation5] sm:$0xff] }
  0x27   :  { %160 = vmatprep.subr.bf16.mxu0 %v247_v0  ;;  %157 = vmatprep.mubr.msk.f32.mxu0 %vm248_vm0, %v249_v1  ;;  %v43_v3 = vld [vmem:[#allocation5 + $0x8] sm:$0xff]  ;;  %v41_v5 = vld [vmem:[#allocation2] sm:$0xff]  ;;  %vm44_vm1 = vcmask 130048   ;;  %s250_s13 = smov [#allocation7]  }
  0x28   :  { %v161_v4 = vpack.c.bf16 %v43_v3, %v42_v2  ;;  %v148_v6 = vld [vmem:[%s322_s2] ss:$0 sm:$0xff]  ;;  %v149_v8 = vld [vmem:[%s322_s2 + $0x1] ss:$0 sm:$0xff]  ;;  %s137_s14 = sshll.u32 %s250_s13, 4  ;;  %s138_s14 = int_to_ptr.vmem [resolvable:$true] %s137_s14 }
  0x29   :  { %s215_s15 = scalar_lea.vmem %s138_s14, 128  ;;  %p220_p3 = scmp.lt.s32.totalorder %s138_s14, %s138_s14 }
  0x2a   :  { %162 = vmatpush3.bf16.msra.mxu0 %v161_v4  ;;  %p216_p2 = scmp.ne.s32.totalorder %s138_s14, %s215_s15  ;;  %p221_p4 = scmp.lt.s32.totalorder %s215_s15, %s215_s15 }
  0x2c   :  { %p222_p5 = por %p221_p4, %p220_p3 }
  0x2d   :  { %158 = vmatmul.mubr.msk.f32.vlgmr.msra.gmra.mrb[0].mxu0 %vm44_vm1, %v41_v5 }
  0x2e   :  { %p223_p6 = pnand %p222_p5, %p216_p2 }
 0x100   :  { %v114_v7 = vpop.f32.mrb[0].mxu0 }
 0x101   :  { %v123_v9 = vmul.f32 %v148_v6, %v114_v7  ;;  %v159_v10 = vpop.f32.mrb[1].mxu0 }
 0x103   :  { %v129_v11 = vadd.f32 %v149_v8, %v123_v9 }
 0x105   :  { %130 = vst [vmem:[#allocation7] sm:$0xff] %v129_v11 }
 0x106   :  { %226 = shalt.err (!%p223_p6)
}
 0x107   :  { %s227_s18 = scalar_lea.hbm %s323_s3, 128 }
 0x108   :  { %p228_p7 = scmp.ne.s32.totalorder %s323_s3, %s227_s18  ;;  %p231_p8 = scmp.lt.u32.totalorder %s227_s18, %s323_s3 }
 0x10a   :  { %p233_p9 = pnand %p231_p8, %p228_p7 }
 0x10c   :  { %236 = shalt.err (!%p233_p9)
}
 0x10d   :  { %140 = dma.vmem_to_hbm [thread:$0]  %s138_s14, 128, %s323_s3, [#allocation4]  }
 0x10e   :  { %241 = dma.done.wait [#allocation4], 128  }
 0x10f   :  { %242 = vsyncadd [#allocation4], 4294967168 }
 0x110   :  { %144 = vsyncpa [#allocation3], 1 }
 0x111   :  { %145 = vsyncpa [#allocation6], 1 }
 0x112   :  { %146 = vsyncpa [#allocation4], 1 }

</bundles_post_ra>
